<compile_context>
chip_gen: v6e
topology: v6e:2x2x1
jax: 0.10.0
libtpu: 0.0.40
codegen_flags: <defaults>
</compile_context>

<pallas_src>
import math
import numpy as np

import jax
import jax.numpy as jnp
from jax.experimental import pallas as pl
from jax.experimental.pallas import tpu as pltpu

_BN_EPS = 1e-5
_INV_SQRT2 = 1.0 / math.sqrt(2.0)


def _gelu_exact(x):
    # PyTorch nn.GELU() default (approximate='none'): 0.5*x*(1+erf(x/sqrt(2)))
    return 0.5 * x * (1.0 + jax.lax.erf(x * _INV_SQRT2))


def _silu(x):
    return x * jax.nn.sigmoid(x)


# --------------------------------------------------------------------------
# Kernel
# --------------------------------------------------------------------------
def _make_kernel(num_hidden, dec_split):
    """Build the fused forward kernel for `num_hidden` shared layers.

    Ref layout after x_ref (each entry is a (W, b) pair of refs):
      enc pairs   : num_hidden + 1
      fused z pr  : 1     (decoder[0] and syn[0] fused along the out dim)
      dec pairs   : num_hidden      (decoder layers 1 .. num_hidden)
      syn pair    : 1     (syn head layer 1)
    followed by the three output refs (latent, recon, syn).
    """
    n_pairs = (num_hidden + 1) + 1 + num_hidden + 1

    def kernel(x_ref, *refs):
        param_refs = refs[: 2 * n_pairs]
        latent_ref, recon_ref, syn_ref = refs[2 * n_pairs:]
        pairs = [(param_refs[2 * i], param_refs[2 * i + 1]) for i in range(n_pairs)]
        enc_pairs = pairs[: num_hidden + 1]
        zw_ref, zb_ref = pairs[num_hidden + 1]
        dec_pairs = pairs[num_hidden + 2: num_hidden + 2 + num_hidden]
        sw1_ref, sb1_ref = pairs[-1]

        def dense(h, w_ref, b_ref):
            w = w_ref[...]
            # activations stay f32; cast only at the MXU boundary if weights
            # are bf16 (f32 accumulation via preferred_element_type).
            return (
                jnp.dot(h.astype(w.dtype), w, preferred_element_type=jnp.float32)
                + b_ref[...]
            )

        # ---------------- encoder (BN scale pre-folded; Dropout = id) -------
        h = x_ref[...]
        for w_ref, b_ref in enc_pairs[:-1]:
            h = _gelu_exact(dense(h, w_ref, b_ref))
        z = dense(h, enc_pairs[-1][0], enc_pairs[-1][1])
        latent_ref[...] = z

        # ------- single lane-dense matmul feeding decoder[0] and syn[0] -----
        zz = dense(z, zw_ref, zb_ref)
        d = _gelu_exact(zz[:, :dec_split])   # decoder branch (BN folded)
        s = _silu(zz[:, dec_split:])         # synthetic-head branch (BN folded)

        # ---------------- rest of decoder -----------------------------------
        for i, (w_ref, b_ref) in enumerate(dec_pairs):
            t = dense(d, w_ref, b_ref)
            d = _gelu_exact(t) if i < num_hidden - 1 else t
        recon_ref[...] = d

        # ------------- synthetic head tail + F.normalize (rsqrt -> EUP) -----
        s = dense(s, sw1_ref, sb1_ref)       # BN(64, affine=False) scale folded
        sumsq = jnp.sum(s * s, axis=1, keepdims=True)
        # F.normalize(dim=1, eps=1e-12): x / max(||x||, 1e-12)
        syn_ref[...] = s * jax.lax.rsqrt(jnp.maximum(sumsq, 1e-24))

    return kernel


# --------------------------------------------------------------------------
# Host-side parameter preparation
# --------------------------------------------------------------------------
def prepare_kernel_params(params, compute_dtype=jnp.float32):
    """Fold eval-mode BN scale into the preceding Linear, fuse the two
    consumers of z into one lane-dense weight, and cast weights to
    `compute_dtype` (biases and in-kernel elementwise math stay f32)."""
    s = 1.0 / math.sqrt(1.0 + _BN_EPS)
    enc_w, enc_b = params["enc_w"], params["enc_b"]
    dec_w, dec_b = params["dec_w"], params["dec_b"]
    syn_w, syn_b = params["syn_w"], params["syn_b"]
    n = len(enc_w) - 1  # number of shared hidden layers

    def fold(w, b):
        return w * s, b * s

    flat = []

    def add(w, b):
        flat.append(jnp.asarray(w, compute_dtype))
        flat.append(jnp.asarray(b, jnp.float32).reshape(1, -1))

    # encoder: hidden layers have a following BN -> fold; final linear does not
    for i in range(n):
        add(*fold(enc_w[i], enc_b[i]))
    add(enc_w[n], enc_b[n])

    # fuse decoder[0] and syn[0] (both consume z, both followed by BN)
    dw0, db0 = fold(dec_w[0], dec_b[0])
    sw0, sb0 = fold(syn_w[0], syn_b[0])
    add(jnp.concatenate([dw0, sw0], axis=1),
        jnp.concatenate([db0, sb0], axis=0))

    # remaining decoder layers (1..n-1 have BN, final one does not)
    for i in range(1, n):
        add(*fold(dec_w[i], dec_b[i]))
    add(dec_w[n], dec_b[n])

    # syn head layer 1 is followed by BatchNorm1d(64, affine=False) -> fold
    add(*fold(syn_w[1], syn_b[1]))

    dec_split = dec_w[0].shape[1]
    return flat, n, dec_split


# --------------------------------------------------------------------------
# Wrapper
# --------------------------------------------------------------------------
def hybrid_contrastive_ae_forward(x, params, compute_dtype=jnp.float32,
                                  max_batch_tile=256):
    x = jnp.asarray(x, jnp.float32)
    B, input_dim = x.shape
    latent_dim = params["enc_w"][-1].shape[1]
    syn_out = params["syn_w"][-1].shape[1]

    flat, num_hidden, dec_split = prepare_kernel_params(params, compute_dtype)

    def _round_up(a, m):
        return ((a + m - 1) // m) * m

    # Batch tiling: large sublane-aligned tiles; pad B so the grid is exact and
    # the batch axis can be sharded "parallel" across TensorCores (v7x).
    tb = min(max_batch_tile, _round_up(B, 8))
    Bp = _round_up(B, tb)
    if Bp != B:
        x = jnp.pad(x, ((0, Bp - B), (0, 0)))
    grid = (Bp // tb,)

    def batch_spec(cols):
        return pl.BlockSpec((tb, cols), lambda i: (i, 0))

    def param_spec(p):
        # whole-array block, constant index -> fetched once, no re-DMA per step
        return pl.BlockSpec(p.shape, lambda i: (0, 0))

    in_specs = [batch_spec(input_dim)] + [param_spec(p) for p in flat]
    out_specs = [batch_spec(latent_dim), batch_spec(input_dim), batch_spec(syn_out)]
    out_shape = (
        jax.ShapeDtypeStruct((Bp, latent_dim), jnp.float32),
        jax.ShapeDtypeStruct((Bp, input_dim), jnp.float32),
        jax.ShapeDtypeStruct((Bp, syn_out), jnp.float32),
    )

    kernel = _make_kernel(num_hidden, dec_split)

    fn = pl.pallas_call(
        kernel,
        out_shape=out_shape,
        grid_spec=pltpu.PrefetchScalarGridSpec(
            num_scalar_prefetch=0,
            grid=grid,
            in_specs=in_specs,
            out_specs=out_specs,
        ),
        compiler_params=pltpu.CompilerParams(
            dimension_semantics=("parallel",),
            vmem_limit_bytes=32 * 1024 * 1024,
        ),
    )
    latent, recon, syn = fn(x, *flat)
    if Bp != B:
        latent, recon, syn = latent[:B], recon[:B], syn[:B]
    return {"latent": latent, "recon": recon, "synthetic": syn}


# --------------------------------------------------------------------------
# Deterministic parameter construction
# --------------------------------------------------------------------------
def init_params(key, input_dim, shared_dims, latent_dim):
    enc_dims = [input_dim] + list(shared_dims) + [latent_dim]
    dec_dims = [latent_dim] + list(reversed(shared_dims)) + [input_dim]
    syn_dims = [latent_dim, latent_dim * 2, 64]

    def linear(k, fan_in, fan_out, zero_bias=False):
        kw, kb = jax.random.split(k)
        w = jax.random.normal(kw, (fan_in, fan_out), jnp.float32) / jnp.sqrt(
            jnp.float32(fan_in))
        if zero_bias:
            b = jnp.zeros((fan_out,), jnp.float32)
        else:
            b = 0.01 * jax.random.normal(kb, (fan_out,), jnp.float32)
        return w, b

    params = {"enc_w": [], "enc_b": [], "dec_w": [], "dec_b": [],
              "syn_w": [], "syn_b": []}
    keys = jax.random.split(key, len(enc_dims) + len(dec_dims) + len(syn_dims))
    ki = 0
    for i in range(len(enc_dims) - 1):
        w, b = linear(keys[ki], enc_dims[i], enc_dims[i + 1]); ki += 1
        params["enc_w"].append(w); params["enc_b"].append(b)
    for i in range(len(dec_dims) - 1):
        w, b = linear(keys[ki], dec_dims[i], dec_dims[i + 1]); ki += 1
        params["dec_w"].append(w); params["dec_b"].append(b)
    for i in range(len(syn_dims) - 1):
        # PyTorch head uses xavier_normal weights and zero biases
        w, b = linear(keys[ki], syn_dims[i], syn_dims[i + 1], zero_bias=True); ki += 1
        params["syn_w"].append(w); params["syn_b"].append(b)
    return params


# --------------------------------------------------------------------------
# Pure-JAX reference (un-fused, un-folded f32 math)
# --------------------------------------------------------------------------
def reference_forward(x, params):
    bn_scale = 1.0 / np.sqrt(1.0 + _BN_EPS)

    def lin(h, w, b):
        return h @ w + b

    h = x
    for i in range(len(params["enc_w"]) - 1):
        h = _gelu_exact(lin(h, params["enc_w"][i], params["enc_b"][i]) * bn_scale)
    z = lin(h, params["enc_w"][-1], params["enc_b"][-1])

    d = z
    for i in range(len(params["dec_w"]) - 1):
        d = _gelu_exact(lin(d, params["dec_w"][i], params["dec_b"][i]) * bn_scale)
    recon = lin(d, params["dec_w"][-1], params["dec_b"][-1])

    s = _silu(lin(z, params["syn_w"][0], params["syn_b"][0]) * bn_scale)
    s = lin(s, params["syn_w"][1], params["syn_b"][1]) * bn_scale
    syn = s / jnp.maximum(jnp.sqrt(jnp.sum(s * s, axis=1, keepdims=True)), 1e-12)
    return z, recon, syn


if __name__ == "__main__":
    # Small, config-consistent shapes:
    #   input_dim > shared_dims[0], latent_dim <= min(shared_dims)
    B, INPUT_DIM = 8, 256
    SHARED_DIMS = (128, 64)
    LATENT_DIM = 32

    key = jax.random.PRNGKey(0)
    kx, kp = jax.random.split(key)
    x = jax.random.normal(kx, (B, INPUT_DIM), jnp.float32)
    params = init_params(kp, INPUT_DIM, SHARED_DIMS, LATENT_DIM)

    ref_latent, ref_recon, ref_syn = reference_forward(x, params)

    # ---- f32 path: strict numerical check against the reference ----
    outputs = hybrid_contrastive_ae_forward(x, params, compute_dtype=jnp.float32)
    jax.block_until_ready(outputs)
    np.testing.assert_allclose(np.asarray(outputs["latent"]), np.asarray(ref_latent),
                               rtol=2e-2, atol=2e-3)
    np.testing.assert_allclose(np.asarray(outputs["recon"]), np.asarray(ref_recon),
                               rtol=2e-2, atol=2e-3)
    np.testing.assert_allclose(np.asarray(outputs["synthetic"]), np.asarray(ref_syn),
                               rtol=2e-2, atol=2e-3)
    assert outputs["latent"].shape == (B, LATENT_DIM)
    assert outputs["recon"].shape == (B, INPUT_DIM)
    assert outputs["synthetic"].shape == (B, 64)

    # ---- bf16-weight path (MXU-native on v6e/v7x): smoke/accuracy check ----
    outputs_bf16 = hybrid_contrastive_ae_forward(x, params, compute_dtype=jnp.bfloat16)
    jax.block_until_ready(outputs_bf16)
    np.testing.assert_allclose(np.asarray(outputs_bf16["latent"]), np.asarray(ref_latent),
                               rtol=1e-1, atol=1e-1)
    np.testing.assert_allclose(np.asarray(outputs_bf16["recon"]), np.asarray(ref_recon),
                               rtol=1e-1, atol=1e-1)
    np.testing.assert_allclose(np.asarray(outputs_bf16["synthetic"]), np.asarray(ref_syn),
                               rtol=1e-1, atol=1e-1)

    print("KERNEL_OK")
</pallas_src>

<mosaic_0001>
module attributes {stable_mosaic.version = 11 : i64} {
  func.func @kernel(%arg0: i32, %arg1: memref<8x256xf32, #tpu.memory_space<vmem>>, %arg2: memref<256x128xf32, #tpu.memory_space<vmem>>, %arg3: memref<1x128xf32, #tpu.memory_space<vmem>>, %arg4: memref<128x64xf32, #tpu.memory_space<vmem>>, %arg5: memref<1x64xf32, #tpu.memory_space<vmem>>, %arg6: memref<64x32xf32, #tpu.memory_space<vmem>>, %arg7: memref<1x32xf32, #tpu.memory_space<vmem>>, %arg8: memref<32x128xf32, #tpu.memory_space<vmem>>, %arg9: memref<1x128xf32, #tpu.memory_space<vmem>>, %arg10: memref<64x128xf32, #tpu.memory_space<vmem>>, %arg11: memref<1x128xf32, #tpu.memory_space<vmem>>, %arg12: memref<128x256xf32, #tpu.memory_space<vmem>>, %arg13: memref<1x256xf32, #tpu.memory_space<vmem>>, %arg14: memref<64x64xf32, #tpu.memory_space<vmem>>, %arg15: memref<1x64xf32, #tpu.memory_space<vmem>>, %arg16: memref<8x32xf32, #tpu.memory_space<vmem>>, %arg17: memref<8x256xf32, #tpu.memory_space<vmem>>, %arg18: memref<8x64xf32, #tpu.memory_space<vmem>>) attributes {dimension_semantics = [#tpu.dimension_semantics<parallel>], iteration_bounds = array<i64: 1>, scalar_prefetch = 0 : i64, scratch_operands = 0 : i64, tpu.core_type = #tpu.core_type<tc>, window_params = [{transform_indices = @transform_0, window_bounds = array<i64: 8, 256>}, {pipeline_mode = #tpu.pipeline_mode<synchronous>, transform_indices = @transform_1, window_bounds = array<i64: 256, 128>}, {pipeline_mode = #tpu.pipeline_mode<synchronous>, transform_indices = @transform_2, window_bounds = array<i64: 1, 128>}, {pipeline_mode = #tpu.pipeline_mode<synchronous>, transform_indices = @transform_3, window_bounds = array<i64: 128, 64>}, {pipeline_mode = #tpu.pipeline_mode<synchronous>, transform_indices = @transform_4, window_bounds = array<i64: 1, 64>}, {pipeline_mode = #tpu.pipeline_mode<synchronous>, transform_indices = @transform_5, window_bounds = array<i64: 64, 32>}, {pipeline_mode = #tpu.pipeline_mode<synchronous>, transform_indices = @transform_6, window_bounds = array<i64: 1, 32>}, {pipeline_mode = #tpu.pipeline_mode<synchronous>, transform_indices = @transform_7, window_bounds = array<i64: 32, 128>}, {pipeline_mode = #tpu.pipeline_mode<synchronous>, transform_indices = @transform_8, window_bounds = array<i64: 1, 128>}, {pipeline_mode = #tpu.pipeline_mode<synchronous>, transform_indices = @transform_9, window_bounds = array<i64: 64, 128>}, {pipeline_mode = #tpu.pipeline_mode<synchronous>, transform_indices = @transform_10, window_bounds = array<i64: 1, 128>}, {pipeline_mode = #tpu.pipeline_mode<synchronous>, transform_indices = @transform_11, window_bounds = array<i64: 128, 256>}, {pipeline_mode = #tpu.pipeline_mode<synchronous>, transform_indices = @transform_12, window_bounds = array<i64: 1, 256>}, {pipeline_mode = #tpu.pipeline_mode<synchronous>, transform_indices = @transform_13, window_bounds = array<i64: 64, 64>}, {pipeline_mode = #tpu.pipeline_mode<synchronous>, transform_indices = @transform_14, window_bounds = array<i64: 1, 64>}, {transform_indices = @transform_15, window_bounds = array<i64: 8, 32>}, {transform_indices = @transform_16, window_bounds = array<i64: 8, 256>}, {transform_indices = @transform_17, window_bounds = array<i64: 8, 64>}]} {
    %c0 = arith.constant 0 : index
    %c0_0 = arith.constant 0 : index
    %0 = vector.load %arg1[%c0, %c0_0] : memref<8x256xf32, #tpu.memory_space<vmem>>, vector<8x256xf32>
    %c0_1 = arith.constant 0 : index
    %c0_2 = arith.constant 0 : index
    %1 = vector.load %arg2[%c0_1, %c0_2] : memref<256x128xf32, #tpu.memory_space<vmem>>, vector<256x128xf32>
    %cst = arith.constant dense<0.000000e+00> : vector<8x128xf32>
    %2 = tpu.matmul %0, %1, %cst {dimension_numbers = #tpu.dot_dimension_numbers<[1], [0], [0], [1], [0, 0, 1, 1], [], []>} : vector<8x256xf32>, vector<256x128xf32>, vector<8x128xf32> -> vector<8x128xf32>
    %c0_3 = arith.constant 0 : index
    %c0_4 = arith.constant 0 : index
    %3 = vector.load %arg3[%c0_3, %c0_4] : memref<1x128xf32, #tpu.memory_space<vmem>>, vector<1x128xf32>
    %4 = vector.broadcast %3 : vector<1x128xf32> to vector<8x128xf32>
    %5 = arith.addf %2, %4 : vector<8x128xf32>
    %cst_5 = arith.constant 5.000000e-01 : f32
    %6 = vector.broadcast %cst_5 : f32 to vector<8x128xf32>
    %7 = arith.mulf %6, %5 : vector<8x128xf32>
    %cst_6 = arith.constant 0.707106769 : f32
    %8 = vector.broadcast %cst_6 : f32 to vector<8x128xf32>
    %9 = arith.mulf %5, %8 : vector<8x128xf32>
    %10 = math.erf %9 : vector<8x128xf32>
    %cst_7 = arith.constant 1.000000e+00 : f32
    %11 = vector.broadcast %cst_7 : f32 to vector<8x128xf32>
    %12 = arith.addf %11, %10 : vector<8x128xf32>
    %13 = arith.mulf %7, %12 : vector<8x128xf32>
    %c0_8 = arith.constant 0 : index
    %c0_9 = arith.constant 0 : index
    %14 = vector.load %arg4[%c0_8, %c0_9] : memref<128x64xf32, #tpu.memory_space<vmem>>, vector<128x64xf32>
    %cst_10 = arith.constant dense<0.000000e+00> : vector<8x64xf32>
    %15 = tpu.matmul %13, %14, %cst_10 {dimension_numbers = #tpu.dot_dimension_numbers<[1], [0], [0], [1], [0, 0, 1, 1], [], []>} : vector<8x128xf32>, vector<128x64xf32>, vector<8x64xf32> -> vector<8x64xf32>
    %c0_11 = arith.constant 0 : index
    %c0_12 = arith.constant 0 : index
    %16 = vector.load %arg5[%c0_11, %c0_12] : memref<1x64xf32, #tpu.memory_space<vmem>>, vector<1x64xf32>
    %17 = vector.broadcast %16 : vector<1x64xf32> to vector<8x64xf32>
    %18 = arith.addf %15, %17 : vector<8x64xf32>
    %cst_13 = arith.constant 5.000000e-01 : f32
    %19 = vector.broadcast %cst_13 : f32 to vector<8x64xf32>
    %20 = arith.mulf %19, %18 : vector<8x64xf32>
    %cst_14 = arith.constant 0.707106769 : f32
    %21 = vector.broadcast %cst_14 : f32 to vector<8x64xf32>
    %22 = arith.mulf %18, %21 : vector<8x64xf32>
    %23 = math.erf %22 : vector<8x64xf32>
    %cst_15 = arith.constant 1.000000e+00 : f32
    %24 = vector.broadcast %cst_15 : f32 to vector<8x64xf32>
    %25 = arith.addf %24, %23 : vector<8x64xf32>
    %26 = arith.mulf %20, %25 : vector<8x64xf32>
    %c0_16 = arith.constant 0 : index
    %c0_17 = arith.constant 0 : index
    %27 = vector.load %arg6[%c0_16, %c0_17] : memref<64x32xf32, #tpu.memory_space<vmem>>, vector<64x32xf32>
    %cst_18 = arith.constant dense<0.000000e+00> : vector<8x32xf32>
    %28 = tpu.matmul %26, %27, %cst_18 {dimension_numbers = #tpu.dot_dimension_numbers<[1], [0], [0], [1], [0, 0, 1, 1], [], []>} : vector<8x64xf32>, vector<64x32xf32>, vector<8x32xf32> -> vector<8x32xf32>
    %c0_19 = arith.constant 0 : index
    %c0_20 = arith.constant 0 : index
    %29 = vector.load %arg7[%c0_19, %c0_20] : memref<1x32xf32, #tpu.memory_space<vmem>>, vector<1x32xf32>
    %30 = vector.broadcast %29 : vector<1x32xf32> to vector<8x32xf32>
    %31 = arith.addf %28, %30 : vector<8x32xf32>
    %c0_21 = arith.constant 0 : index
    %c0_22 = arith.constant 0 : index
    %32 = vector.load %arg16[%c0_21, %c0_22] : memref<8x32xf32, #tpu.memory_space<vmem>>, vector<8x32xf32>
    tpu.vector_store %arg16[%c0_21, %c0_22], %31 {strides = array<i32>} : memref<8x32xf32, #tpu.memory_space<vmem>>, vector<8x32xf32>,
    %c0_23 = arith.constant 0 : index
    %c0_24 = arith.constant 0 : index
    %33 = vector.load %arg8[%c0_23, %c0_24] : memref<32x128xf32, #tpu.memory_space<vmem>>, vector<32x128xf32>
    %cst_25 = arith.constant dense<0.000000e+00> : vector<8x128xf32>
    %34 = tpu.matmul %31, %33, %cst_25 {dimension_numbers = #tpu.dot_dimension_numbers<[1], [0], [0], [1], [0, 0, 1, 1], [], []>} : vector<8x32xf32>, vector<32x128xf32>, vector<8x128xf32> -> vector<8x128xf32>
    %c0_26 = arith.constant 0 : index
    %c0_27 = arith.constant 0 : index
    %35 = vector.load %arg9[%c0_26, %c0_27] : memref<1x128xf32, #tpu.memory_space<vmem>>, vector<1x128xf32>
    %36 = vector.broadcast %35 : vector<1x128xf32> to vector<8x128xf32>
    %37 = arith.addf %34, %36 : vector<8x128xf32>
    %38 = vector.extract_strided_slice %37 {offsets = [0, 0], sizes = [8, 64], strides = [1, 1]} : vector<8x128xf32> to vector<8x64xf32>
    %cst_28 = arith.constant 5.000000e-01 : f32
    %39 = vector.broadcast %cst_28 : f32 to vector<8x64xf32>
    %40 = arith.mulf %39, %38 : vector<8x64xf32>
    %cst_29 = arith.constant 0.707106769 : f32
    %41 = vector.broadcast %cst_29 : f32 to vector<8x64xf32>
    %42 = arith.mulf %38, %41 : vector<8x64xf32>
    %43 = math.erf %42 : vector<8x64xf32>
    %cst_30 = arith.constant 1.000000e+00 : f32
    %44 = vector.broadcast %cst_30 : f32 to vector<8x64xf32>
    %45 = arith.addf %44, %43 : vector<8x64xf32>
    %46 = arith.mulf %40, %45 : vector<8x64xf32>
    %47 = vector.extract_strided_slice %37 {offsets = [0, 64], sizes = [8, 64], strides = [1, 1]} : vector<8x128xf32> to vector<8x64xf32>
    %48 = arith.negf %47 : vector<8x64xf32>
    %49 = math.exp %48 : vector<8x64xf32>
    %cst_31 = arith.constant 1.000000e+00 : f32
    %50 = vector.broadcast %cst_31 : f32 to vector<8x64xf32>
    %51 = arith.addf %50, %49 : vector<8x64xf32>
    %52 = arith.divf %50, %51 : vector<8x64xf32>
    %53 = arith.mulf %47, %52 : vector<8x64xf32>
    %c0_32 = arith.constant 0 : index
    %c0_33 = arith.constant 0 : index
    %54 = vector.load %arg10[%c0_32, %c0_33] : memref<64x128xf32, #tpu.memory_space<vmem>>, vector<64x128xf32>
    %cst_34 = arith.constant dense<0.000000e+00> : vector<8x128xf32>
    %55 = tpu.matmul %46, %54, %cst_34 {dimension_numbers = #tpu.dot_dimension_numbers<[1], [0], [0], [1], [0, 0, 1, 1], [], []>} : vector<8x64xf32>, vector<64x128xf32>, vector<8x128xf32> -> vector<8x128xf32>
    %c0_35 = arith.constant 0 : index
    %c0_36 = arith.constant 0 : index
    %56 = vector.load %arg11[%c0_35, %c0_36] : memref<1x128xf32, #tpu.memory_space<vmem>>, vector<1x128xf32>
    %57 = vector.broadcast %56 : vector<1x128xf32> to vector<8x128xf32>
    %58 = arith.addf %55, %57 : vector<8x128xf32>
    %cst_37 = arith.constant 5.000000e-01 : f32
    %59 = vector.broadcast %cst_37 : f32 to vector<8x128xf32>
    %60 = arith.mulf %59, %58 : vector<8x128xf32>
    %cst_38 = arith.constant 0.707106769 : f32
    %61 = vector.broadcast %cst_38 : f32 to vector<8x128xf32>
    %62 = arith.mulf %58, %61 : vector<8x128xf32>
    %63 = math.erf %62 : vector<8x128xf32>
    %cst_39 = arith.constant 1.000000e+00 : f32
    %64 = vector.broadcast %cst_39 : f32 to vector<8x128xf32>
    %65 = arith.addf %64, %63 : vector<8x128xf32>
    %66 = arith.mulf %60, %65 : vector<8x128xf32>
    %c0_40 = arith.constant 0 : index
    %c0_41 = arith.constant 0 : index
    %67 = vector.load %arg12[%c0_40, %c0_41] : memref<128x256xf32, #tpu.memory_space<vmem>>, vector<128x256xf32>
    %cst_42 = arith.constant dense<0.000000e+00> : vector<8x256xf32>
    %68 = tpu.matmul %66, %67, %cst_42 {dimension_numbers = #tpu.dot_dimension_numbers<[1], [0], [0], [1], [0, 0, 1, 1], [], []>} : vector<8x128xf32>, vector<128x256xf32>, vector<8x256xf32> -> vector<8x256xf32>
    %c0_43 = arith.constant 0 : index
    %c0_44 = arith.constant 0 : index
    %69 = vector.load %arg13[%c0_43, %c0_44] : memref<1x256xf32, #tpu.memory_space<vmem>>, vector<1x256xf32>
    %70 = vector.broadcast %69 : vector<1x256xf32> to vector<8x256xf32>
    %71 = arith.addf %68, %70 : vector<8x256xf32>
    %c0_45 = arith.constant 0 : index
    %c0_46 = arith.constant 0 : index
    %72 = vector.load %arg17[%c0_45, %c0_46] : memref<8x256xf32, #tpu.memory_space<vmem>>, vector<8x256xf32>
    tpu.vector_store %arg17[%c0_45, %c0_46], %71 {strides = array<i32>} : memref<8x256xf32, #tpu.memory_space<vmem>>, vector<8x256xf32>,
    %c0_47 = arith.constant 0 : index
    %c0_48 = arith.constant 0 : index
    %73 = vector.load %arg14[%c0_47, %c0_48] : memref<64x64xf32, #tpu.memory_space<vmem>>, vector<64x64xf32>
    %cst_49 = arith.constant dense<0.000000e+00> : vector<8x64xf32>
    %74 = tpu.matmul %53, %73, %cst_49 {dimension_numbers = #tpu.dot_dimension_numbers<[1], [0], [0], [1], [0, 0, 1, 1], [], []>} : vector<8x64xf32>, vector<64x64xf32>, vector<8x64xf32> -> vector<8x64xf32>
    %c0_50 = arith.constant 0 : index
    %c0_51 = arith.constant 0 : index
    %75 = vector.load %arg15[%c0_50, %c0_51] : memref<1x64xf32, #tpu.memory_space<vmem>>, vector<1x64xf32>
    %76 = vector.broadcast %75 : vector<1x64xf32> to vector<8x64xf32>
    %77 = arith.addf %74, %76 : vector<8x64xf32>
    %78 = arith.mulf %77, %77 : vector<8x64xf32>
    %cst_52 = arith.constant dense<0.000000e+00> : vector<8xf32>
    %79 = vector.multi_reduction <add>, %78, %cst_52 [1] : vector<8x64xf32> to vector<8xf32>
    %80 = vector.shape_cast %79 : vector<8xf32> to vector<8x1xf32>
    %cst_53 = arith.constant 1.000000e-24 : f32
    %81 = vector.broadcast %cst_53 : f32 to vector<8x1xf32>
    %82 = arith.maximumf %80, %81 : vector<8x1xf32>
    %83 = math.rsqrt %82 : vector<8x1xf32>
    %84 = vector.broadcast %83 : vector<8x1xf32> to vector<8x64xf32>
    %85 = arith.mulf %77, %84 : vector<8x64xf32>
    %c0_54 = arith.constant 0 : index
    %c0_55 = arith.constant 0 : index
    %86 = vector.load %arg18[%c0_54, %c0_55] : memref<8x64xf32, #tpu.memory_space<vmem>>, vector<8x64xf32>
    tpu.vector_store %arg18[%c0_54, %c0_55], %85 {strides = array<i32>} : memref<8x64xf32, #tpu.memory_space<vmem>>, vector<8x64xf32>,
    return
  }
  func.func @transform_0(%arg0: i32) -> (i32, i32) {
    %c0_i32 = arith.constant 0 : i32
    %c0_i32_0 = arith.constant 0 : i32
    return %arg0, %c0_i32 : i32, i32
  }
  func.func @transform_1(%arg0: i32) -> (i32, i32) {
    %c0_i32 = arith.constant 0 : i32
    %c0_i32_0 = arith.constant 0 : i32
    %c0_i32_1 = arith.constant 0 : i32
    return %c0_i32, %c0_i32_0 : i32, i32
  }
  func.func @transform_2(%arg0: i32) -> (i32, i32) {
    %c0_i32 = arith.constant 0 : i32
    %c0_i32_0 = arith.constant 0 : i32
    %c0_i32_1 = arith.constant 0 : i32
    return %c0_i32, %c0_i32_0 : i32, i32
  }
  func.func @transform_3(%arg0: i32) -> (i32, i32) {
    %c0_i32 = arith.constant 0 : i32
    %c0_i32_0 = arith.constant 0 : i32
    %c0_i32_1 = arith.constant 0 : i32
    return %c0_i32, %c0_i32_0 : i32, i32
  }
  func.func @transform_4(%arg0: i32) -> (i32, i32) {
    %c0_i32 = arith.constant 0 : i32
    %c0_i32_0 = arith.constant 0 : i32
    %c0_i32_1 = arith.constant 0 : i32
    return %c0_i32, %c0_i32_0 : i32, i32
  }
  func.func @transform_5(%arg0: i32) -> (i32, i32) {
    %c0_i32 = arith.constant 0 : i32
    %c0_i32_0 = arith.constant 0 : i32
    %c0_i32_1 = arith.constant 0 : i32
    return %c0_i32, %c0_i32_0 : i32, i32
  }
  func.func @transform_6(%arg0: i32) -> (i32, i32) {
    %c0_i32 = arith.constant 0 : i32
    %c0_i32_0 = arith.constant 0 : i32
    %c0_i32_1 = arith.constant 0 : i32
    return %c0_i32, %c0_i32_0 : i32, i32
  }
  func.func @transform_7(%arg0: i32) -> (i32, i32) {
    %c0_i32 = arith.constant 0 : i32
    %c0_i32_0 = arith.constant 0 : i32
    %c0_i32_1 = arith.constant 0 : i32
    return %c0_i32, %c0_i32_0 : i32, i32
  }
  func.func @transform_8(%arg0: i32) -> (i32, i32) {
    %c0_i32 = arith.constant 0 : i32
    %c0_i32_0 = arith.constant 0 : i32
    %c0_i32_1 = arith.constant 0 : i32
    return %c0_i32, %c0_i32_0 : i32, i32
  }
  func.func @transform_9(%arg0: i32) -> (i32, i32) {
    %c0_i32 = arith.constant 0 : i32
    %c0_i32_0 = arith.constant 0 : i32
    %c0_i32_1 = arith.constant 0 : i32
    return %c0_i32, %c0_i32_0 : i32, i32
  }
  func.func @transform_10(%arg0: i32) -> (i32, i32) {
    %c0_i32 = arith.constant 0 : i32
    %c0_i32_0 = arith.constant 0 : i32
    %c0_i32_1 = arith.constant 0 : i32
    return %c0_i32, %c0_i32_0 : i32, i32
  }
  func.func @transform_11(%arg0: i32) -> (i32, i32) {
    %c0_i32 = arith.constant 0 : i32
    %c0_i32_0 = arith.constant 0 : i32
    %c0_i32_1 = arith.constant 0 : i32
    return %c0_i32, %c0_i32_0 : i32, i32
  }
  func.func @transform_12(%arg0: i32) -> (i32, i32) {
    %c0_i32 = arith.constant 0 : i32
    %c0_i32_0 = arith.constant 0 : i32
    %c0_i32_1 = arith.constant 0 : i32
    return %c0_i32, %c0_i32_0 : i32, i32
  }
  func.func @transform_13(%arg0: i32) -> (i32, i32) {
    %c0_i32 = arith.constant 0 : i32
    %c0_i32_0 = arith.constant 0 : i32
    %c0_i32_1 = arith.constant 0 : i32
    return %c0_i32, %c0_i32_0 : i32, i32
  }
  func.func @transform_14(%arg0: i32) -> (i32, i32) {
    %c0_i32 = arith.constant 0 : i32
    %c0_i32_0 = arith.constant 0 : i32
    %c0_i32_1 = arith.constant 0 : i32
    return %c0_i32, %c0_i32_0 : i32, i32
  }
  func.func @transform_15(%arg0: i32) -> (i32, i32) {
    %c0_i32 = arith.constant 0 : i32
    %c0_i32_0 = arith.constant 0 : i32
    return %arg0, %c0_i32 : i32, i32
  }
  func.func @transform_16(%arg0: i32) -> (i32, i32) {
    %c0_i32 = arith.constant 0 : i32
    %c0_i32_0 = arith.constant 0 : i32
    return %arg0, %c0_i32 : i32, i32
  }
  func.func @transform_17(%arg0: i32) -> (i32, i32) {
    %c0_i32 = arith.constant 0 : i32
    %c0_i32_0 = arith.constant 0 : i32
    return %arg0, %c0_i32 : i32, i32
  }
}

</mosaic_0001>

<bundles_post_ra>
// kernel: tpu_custom_call.1
= control target key start
LH: loop header
LB: loop body
LE: loop exit
PB: predicated region body
PF: predicated region fallthrough
CT: control target
= control target key end

     0   :  { %s1629_s0 = inlined_call_operand.hbm [shape: f32[8,256], index: 0, kind: input, shape index: {}]   ;;  %s1630_s1 = inlined_call_operand.vmem [shape: f32[256,128], index: 1, kind: input, shape index: {}]   ;;  %s1631_s2 = inlined_call_operand.vmem [shape: f32[1,128], index: 2, kind: input, shape index: {}]   ;;  %s1632_s3 = inlined_call_operand.vmem [shape: f32[128,64], index: 3, kind: input, shape index: {}]   ;;  %s1633_s4 = inlined_call_operand.vmem [shape: f32[1,64], index: 4, kind: input, shape index: {}]   ;;  %s1634_s5 = inlined_call_operand.vmem [shape: f32[64,32], index: 5, kind: input, shape index: {}]   ;;  %s1635_s6 = inlined_call_operand.vmem [shape: f32[1,32], index: 6, kind: input, shape index: {}]   ;;  %s1636_s7 = inlined_call_operand.vmem [shape: f32[32,128], index: 7, kind: input, shape index: {}]   ;;  %s1637_s8 = inlined_call_operand.vmem [shape: f32[1,128], index: 8, kind: input, shape index: {}]   ;;  %s1638_s9 = inlined_call_operand.hbm [shape: f32[64,128], index: 9, kind: input, shape index: {}]   ;;  %s1639_s10 = inlined_call_operand.vmem [shape: f32[1,128], index: 10, kind: input, shape index: {}]   ;;  %s1640_s11 = inlined_call_operand.hbm [shape: f32[128,256], index: 11, kind: input, shape index: {}]   ;;  %s1641_s12 = inlined_call_operand.vmem [shape: f32[1,256], index: 12, kind: input, shape index: {}]   ;;  %s1642_s13 = inlined_call_operand.hbm [shape: f32[64,64], index: 13, kind: input, shape index: {}]   ;;  %s1643_s14 = inlined_call_operand.vmem [shape: f32[1,64], index: 14, kind: input, shape index: {}]   ;;  %s1644_s15 = inlined_call_operand.hbm [shape: f32[8,32], index: 15, kind: output, shape index: {0}]   ;;  %s1645_s16 = inlined_call_operand.hbm [shape: f32[8,256], index: 16, kind: output, shape index: {1}]   ;;  %s1646_s17 = inlined_call_operand.hbm [shape: f32[8,64], index: 17, kind: output, shape index: {2}]  }
   0x1   :  { %1648 = sst [smem:[#allocation19_spill]] %s1629_s0 }
   0x2   :  { %1649 = sst [smem:[#allocation20_spill]] %s1630_s1 }
   0x3   :  { %23 = vsyncpa [#allocation3], 0 }
   0x4   :  { %24 = vsyncpa [#allocation6], 0 }
   0x5   :  { %25 = vsyncpa [#allocation9], 0 }
   0x6   :  { %26 = vsyncpa [#allocation4], 0 }
   0x7   :  { %27 = vsyncpa [#allocation12], 0  ;;  %s1237_s24 = smov [#allocation5]  }
   0x8   :  { %s59_s25 = sshll.u32 %s1237_s24, 4  ;;  %s60_s25 = int_to_ptr.vmem [resolvable:$true] %s59_s25 }
   0x9   :  { %s1095_s26 = scalar_lea.vmem %s60_s25, 1024  ;;  %p1100_p1 = scmp.lt.s32.totalorder %s60_s25, %s60_s25 }
   0xa   :  { %p1096_p0 = scmp.ne.s32.totalorder %s60_s25, %s1095_s26  ;;  %p1101_p2 = scmp.lt.s32.totalorder %s1095_s26, %s1095_s26 }
   0xc   :  { %p1102_p3 = por %p1101_p2, %p1100_p1 }
   0xe   :  { %p1103_p4 = pnand %p1102_p3, %p1096_p0 }
  0x10   :  { %1106 = shalt.err (!%p1103_p4)
}
  0x11   :  { %s1238_s27 = smov 128   ;;  %s1239_s28 = smov 8  }
  0x12   :  { %65 = dma.hbm_to_vmem [thread:$0]  %s1638_s9, 1024, %s60_s25, [#allocation6], %s1238_s27, %s1238_s27, %s1239_s28  }
  0x13   :  { %s1240_s30 = smov [#allocation2]   ;;  %s1241_s19 = smov [#allocation7]  }
  0x14   :  { %s34_s18 = sshll.u32 %s1240_s30, 4  ;;  %s73_s1 = sshll.u32 %s1241_s19, 4  ;;  %s35_s18 = int_to_ptr.vmem [resolvable:$true] %s34_s18  ;;  %s74_s1 = int_to_ptr.vmem [resolvable:$true] %s73_s1 }
  0x15   :  { %s1115_s20 = scalar_lea.vmem %s35_s18, 256  ;;  %p1120_p6 = scmp.lt.s32.totalorder %s35_s18, %s35_s18 }
  0x16   :  { %p1116_p5 = scmp.ne.s32.totalorder %s35_s18, %s1115_s20  ;;  %p1121_p7 = scmp.lt.s32.totalorder %s1115_s20, %s1115_s20 }
  0x18   :  { %p1122_p8 = por %p1121_p7, %p1120_p6 }
  0x1a   :  { %p1123_p9 = pnand %p1122_p8, %p1116_p5 }
  0x1c   :  { %1126 = shalt.err (!%p1123_p9)
}
  0x1d   :  { %s1650_s23 = sld [smem:[#allocation19_spill]]  ;;  %s1135_s24 = scalar_lea.vmem %s74_s1, 4096 }
  0x1e   :  { %p1136_p10 = scmp.ne.s32.totalorder %s74_s1, %s1135_s24  ;;  %p1140_p11 = scmp.lt.s32.totalorder %s74_s1, %s74_s1 }
  0x1f   :  { %p1141_p12 = scmp.lt.s32.totalorder %s1135_s24, %s1135_s24 }
  0x21   :  { %p1142_p13 = por %p1141_p12, %p1140_p11 }
  0x23   :  { %37 = dma.hbm_to_vmem [thread:$0]  %s1650_s23, 256, %s35_s18, [#allocation3]  }
  0x24   :  { %p1143_p0 = pnand %p1142_p13, %p1136_p10 }
  0x26   :  { %1146 = shalt.err (!%p1143_p0)
}
  0x27   :  { %s1242_s9 = smov 256   ;;  %s1243_s25 = smov 16  }
  0x28   :  { %79 = dma.hbm_to_vmem [thread:$0]  %s1640_s11, 4096, %s74_s1, [#allocation6], %s1242_s9, %s1242_s9, %s1243_s25  }
  0x29   :  { %s1244_s0 = smov [#allocation8]  }
  0x2a   :  { %s87_s30 = sshll.u32 %s1244_s0, 4  ;;  %s88_s30 = int_to_ptr.vmem [resolvable:$true] %s87_s30 }
  0x2b   :  { %s1155_s19 = scalar_lea.vmem %s88_s30, 1024  ;;  %p1160_p2 = scmp.lt.s32.totalorder %s88_s30, %s88_s30 }
  0x2c   :  { %p1156_p1 = scmp.ne.s32.totalorder %s88_s30, %s1155_s19  ;;  %p1161_p3 = scmp.lt.s32.totalorder %s1155_s19, %s1155_s19 }
  0x2e   :  { %p1162_p4 = por %p1161_p3, %p1160_p2 }
  0x30   :  { %p1163_p5 = pnand %p1162_p4, %p1156_p1 }
  0x32   :  { %1166 = shalt.err (!%p1163_p5)
}
  0x33   :  { %93 = dma.hbm_to_vmem [thread:$0]  %s1642_s13, 1024, %s88_s30, [#allocation9], %s1238_s27, %s1238_s27, %s1239_s28  }
  0x34   :  { %1227 = dma.done.wait [#allocation3], 256  }
  0x35   :  { %1228 = vsyncadd [#allocation3], 4294967040 }
  0x36   :  { %1229 = dma.done.wait [#allocation6], 5120  }
  0x37   :  { %1230 = vsyncadd [#allocation6], 4294962176 }
  0x38   :  { %1231 = dma.done.wait [#allocation9], 1024  }
  0x39   :  { %1232 = vsyncadd [#allocation9], 4294966272  ;;  %v1245_v0 = vmov 0.0   ;;  %s1651_s21 = sld [smem:[#allocation20_spill]]  ;;  %v109_v14 = vld [vmem:[#allocation2 + $0x8] sm:$0xff]  ;;  %v239_v16 = vld [vmem:[%s1632_s3 + $0x78] sm:$0xff] }
  0x3a   :  { %956 = vmatprep.subr.mxu1 %v1245_v0  ;;  %213 = vmatprep.mubr.f32.mxu0 %v109_v14  ;;  %v238_v17 = vld [vmem:[%s1632_s3 + $0x70] sm:$0xff]  ;;  %v108_v36 = vld [vmem:[#allocation2] sm:$0xff]  ;;  %v237_v37 = vld [vmem:[%s1632_s3 + $0x68] sm:$0xff]  ;;  %vm1246_vm0 = vmmov 0   ;;  %vm337_vm1 = vcmask 523264   ;;  %vm411_vm2 = vcmask 261120  }
  0x3b   :  { %957 = vmatpush3.msra.mxu1 %v239_v16  ;;  %v236_v38 = vld [vmem:[%s1632_s3 + $0x60] sm:$0xff]  ;;  %v235_v39 = vld [vmem:[%s1632_s3 + $0x58] sm:$0xff]  ;;  %v234_v40 = vld [vmem:[%s1632_s3 + $0x50] sm:$0xff]  ;;  %988 = vmatprep.mubr.msk.f32.mxu1 %vm1246_vm0, %v1245_v0 }
  0x3c   :  { %958 = vmatprep.subr.mxu1 %v1245_v0  ;;  %v233_v41 = vld [vmem:[%s1632_s3 + $0x48] sm:$0xff]  ;;  %v232_v42 = vld [vmem:[%s1632_s3 + $0x40] sm:$0xff]  ;;  %v231_v43 = vld [vmem:[%s1632_s3 + $0x38] sm:$0xff] }
  0x3d   :  { %959 = vmatpush3.msra.mxu1 %v238_v17  ;;  %v230_v44 = vld [vmem:[%s1632_s3 + $0x30] sm:$0xff]  ;;  %v229_v45 = vld [vmem:[%s1632_s3 + $0x28] sm:$0xff]  ;;  %v228_v46 = vld [vmem:[%s1632_s3 + $0x20] sm:$0xff] }
  0x3e   :  { %960 = vmatprep.subr.mxu1 %v1245_v0  ;;  %v227_v47 = vld [vmem:[%s1632_s3 + $0x18] sm:$0xff]  ;;  %v226_v48 = vld [vmem:[%s1632_s3 + $0x10] sm:$0xff]  ;;  %v225_v49 = vld [vmem:[%s1632_s3 + $0x8] sm:$0xff] }
  0x3f   :  { %v141_v1 = vld [vmem:[%s1651_s21 + $0xf8] sm:$0xff]  ;;  %v140_v3 = vld [vmem:[%s1651_s21 + $0xf0] sm:$0xff]  ;;  %v139_v5 = vld [vmem:[%s1651_s21 + $0xe8] sm:$0xff]  ;;  %961 = vmatpush3.msra.mxu1 %v237_v37 }
  0x40   :  { %v125_v2 = vld [vmem:[%s1651_s21 + $0x78] sm:$0xff]  ;;  %872 = vmatprep.subr.mxu0 %v141_v1  ;;  %v124_v4 = vld [vmem:[%s1651_s21 + $0x70] sm:$0xff]  ;;  %v123_v6 = vld [vmem:[%s1651_s21 + $0x68] sm:$0xff]  ;;  %962 = vmatprep.subr.mxu1 %v1245_v0 }
  0x41   :  { %873 = vmatpush3.msra.mxu0 %v125_v2  ;;  %v138_v7 = vld [vmem:[%s1651_s21 + $0xe0] sm:$0xff]  ;;  %v137_v9 = vld [vmem:[%s1651_s21 + $0xd8] sm:$0xff]  ;;  %v136_v11 = vld [vmem:[%s1651_s21 + $0xd0] sm:$0xff]  ;;  %963 = vmatpush3.msra.mxu1 %v236_v38 }
  0x42   :  { %874 = vmatprep.subr.mxu0 %v140_v3  ;;  %v122_v8 = vld [vmem:[%s1651_s21 + $0x60] sm:$0xff]  ;;  %v121_v10 = vld [vmem:[%s1651_s21 + $0x58] sm:$0xff]  ;;  %v120_v12 = vld [vmem:[%s1651_s21 + $0x50] sm:$0xff]  ;;  %964 = vmatprep.subr.mxu1 %v1245_v0 }
  0x43   :  { %875 = vmatpush3.msra.mxu0 %v124_v4  ;;  %v135_v13 = vld [vmem:[%s1651_s21 + $0xc8] sm:$0xff]  ;;  %v134_v18 = vld [vmem:[%s1651_s21 + $0xc0] sm:$0xff]  ;;  %v133_v20 = vld [vmem:[%s1651_s21 + $0xb8] sm:$0xff]  ;;  %965 = vmatpush3.msra.mxu1 %v235_v39 }
  0x44   :  { %876 = vmatprep.subr.mxu0 %v139_v5  ;;  %v119_v15 = vld [vmem:[%s1651_s21 + $0x48] sm:$0xff]  ;;  %v118_v19 = vld [vmem:[%s1651_s21 + $0x40] sm:$0xff]  ;;  %v117_v21 = vld [vmem:[%s1651_s21 + $0x38] sm:$0xff]  ;;  %966 = vmatprep.subr.mxu1 %v1245_v0 }
  0x45   :  { %877 = vmatpush3.msra.mxu0 %v123_v6  ;;  %v132_v22 = vld [vmem:[%s1651_s21 + $0xb0] sm:$0xff]  ;;  %v131_v24 = vld [vmem:[%s1651_s21 + $0xa8] sm:$0xff]  ;;  %v130_v26 = vld [vmem:[%s1651_s21 + $0xa0] sm:$0xff]  ;;  %967 = vmatpush3.msra.mxu1 %v234_v40 }
  0x46   :  { %878 = vmatprep.subr.mxu0 %v138_v7  ;;  %v116_v23 = vld [vmem:[%s1651_s21 + $0x30] sm:$0xff]  ;;  %v115_v25 = vld [vmem:[%s1651_s21 + $0x28] sm:$0xff]  ;;  %v114_v27 = vld [vmem:[%s1651_s21 + $0x20] sm:$0xff]  ;;  %968 = vmatprep.subr.mxu1 %v1245_v0 }
  0x47   :  { %879 = vmatpush3.msra.mxu0 %v122_v8  ;;  %v129_v28 = vld [vmem:[%s1651_s21 + $0x98] sm:$0xff]  ;;  %v128_v30 = vld [vmem:[%s1651_s21 + $0x90] sm:$0xff]  ;;  %v127_v32 = vld [vmem:[%s1651_s21 + $0x88] sm:$0xff]  ;;  %969 = vmatpush3.msra.mxu1 %v233_v41 }
  0x48   :  { %880 = vmatprep.subr.mxu0 %v137_v9  ;;  %v113_v29 = vld [vmem:[%s1651_s21 + $0x18] sm:$0xff]  ;;  %v112_v31 = vld [vmem:[%s1651_s21 + $0x10] sm:$0xff]  ;;  %v111_v33 = vld [vmem:[%s1651_s21 + $0x8] sm:$0xff]  ;;  %970 = vmatprep.subr.mxu1 %v1245_v0 }
  0x49   :  { %881 = vmatpush3.msra.mxu0 %v121_v10  ;;  %v126_v34 = vld [vmem:[%s1651_s21 + $0x80] sm:$0xff]  ;;  %971 = vmatpush3.msra.mxu1 %v232_v42  ;;  %v329_v61 = vld [vmem:[%s1634_s5 + $0x38] sm:$0xff]  ;;  %v328_v62 = vld [vmem:[%s1634_s5 + $0x30] sm:$0xff] }
  0x4a   :  { %882 = vmatprep.subr.mxu0 %v136_v11  ;;  %v110_v35 = vld [vmem:[%s1651_s21] sm:$0xff]  ;;  %972 = vmatprep.subr.mxu1 %v1245_v0  ;;  %v327_v63 = vld [vmem:[%s1634_s5 + $0x28] sm:$0xff]  ;;  %v325_v2 = vld [vmem:[%s1634_s5 + $0x18] sm:$0xff] }
  0x4b   :  { %883 = vmatpush3.msra.mxu0 %v120_v12  ;;  %973 = vmatpush3.msra.mxu1 %v231_v43  ;;  %v224_v50 = vld [vmem:[%s1632_s3] sm:$0xff]  ;;  %v324_v3 = vld [vmem:[%s1634_s5 + $0x10] sm:$0xff]  ;;  %v323_v4 = vld [vmem:[%s1634_s5 + $0x8] sm:$0xff] }
  0x4c   :  { %884 = vmatprep.subr.mxu0 %v135_v13  ;;  %974 = vmatprep.subr.mxu1 %v1245_v0  ;;  %v861_v52 = vld [vmem:[%s1631_s2] ss:$0 sm:$0xff]  ;;  %v416_v6 = vld [vmem:[%s1636_s7 + $0x18] sm:$0xff]  ;;  %v415_v7 = vld [vmem:[%s1636_s7 + $0x10] sm:$0xff] }
  0x4d   :  { %885 = vmatpush3.msra.mxu0 %v119_v15  ;;  %975 = vmatpush3.msra.mxu1 %v230_v44  ;;  %v326_v1 = vld [vmem:[%s1634_s5 + $0x20] sm:$0xff]  ;;  %v414_v17 = vld [vmem:[%s1636_s7 + $0x8] sm:$0xff] }
  0x4e   :  { %886 = vmatprep.subr.mxu0 %v134_v18  ;;  %976 = vmatprep.subr.mxu1 %v1245_v0  ;;  %v322_v5 = vld [vmem:[%s1634_s5] sm:$0xff]  ;;  %v726_v43 = vld [vmem:[#allocation8 + $0x38] sm:$0xff] }
  0x4f   :  { %887 = vmatpush3.msra.mxu0 %v118_v19  ;;  %977 = vmatpush3.msra.mxu1 %v229_v45  ;;  %v862_v8 = vld [vmem:[%s1633_s4] ss:$0 sm:$0xff]  ;;  %v724_v45 = vld [vmem:[#allocation8 + $0x28] sm:$0xff] }
  0x50   :  { %888 = vmatprep.subr.mxu0 %v133_v20  ;;  %978 = vmatprep.subr.mxu1 %v1245_v0  ;;  %v413_v18 = vld [vmem:[%s1636_s7] sm:$0xff] }
  0x51   :  { %889 = vmatpush3.msra.mxu0 %v117_v21  ;;  %979 = vmatpush3.msra.mxu1 %v228_v46  ;;  %v863_v19 = vld [vmem:[%s1635_s6] ss:$0 sm:$0xff]  ;;  %v633_v46 = vld [vmem:[#allocation7 + $0xf8] sm:$0xff] }
  0x52   :  { %890 = vmatprep.subr.mxu0 %v132_v22  ;;  %980 = vmatprep.subr.mxu1 %v1245_v0  ;;  %v725_v44 = vld [vmem:[#allocation8 + $0x30] sm:$0xff] }
  0x53   :  { %891 = vmatpush3.msra.mxu0 %v116_v23  ;;  %981 = vmatpush3.msra.mxu1 %v227_v47  ;;  %v516_v23 = vld [vmem:[#allocation5 + $0x38] sm:$0xff]  ;;  %v632_v47 = vld [vmem:[#allocation7 + $0xf0] sm:$0xff] }
  0x54   :  { %892 = vmatprep.subr.mxu0 %v131_v24  ;;  %982 = vmatprep.subr.mxu1 %v1245_v0  ;;  %v515_v24 = vld [vmem:[#allocation5 + $0x30] sm:$0xff] }
  0x55   :  { %893 = vmatpush3.msra.mxu0 %v115_v25  ;;  %983 = vmatpush3.msra.mxu1 %v226_v48  ;;  %v514_v25 = vld [vmem:[#allocation5 + $0x28] sm:$0xff] }
  0x56   :  { %894 = vmatprep.subr.mxu0 %v130_v26  ;;  %984 = vmatprep.subr.mxu1 %v1245_v0  ;;  %v513_v26 = vld [vmem:[#allocation5 + $0x20] sm:$0xff]  ;;  %v631_v48 = vld [vmem:[#allocation7 + $0xe8] sm:$0xff] }
  0x57   :  { %895 = vmatpush3.msra.mxu0 %v114_v27  ;;  %985 = vmatpush3.msra.mxu1 %v225_v49  ;;  %v512_v27 = vld [vmem:[#allocation5 + $0x18] sm:$0xff]  ;;  %v630_v49 = vld [vmem:[#allocation7 + $0xe0] sm:$0xff] }
  0x58   :  { %896 = vmatprep.subr.mxu0 %v129_v28  ;;  %986 = vmatprep.subr.mxu1 %v1245_v0  ;;  %v511_v28 = vld [vmem:[#allocation5 + $0x10] sm:$0xff] }
  0x59   :  { %897 = vmatpush3.msra.mxu0 %v113_v29  ;;  %987 = vmatpush3.msra.mxu1 %v224_v50  ;;  %v510_v29 = vld [vmem:[#allocation5 + $0x8] sm:$0xff]  ;;  %v723_v50 = vld [vmem:[#allocation8 + $0x20] sm:$0xff] }
  0x5a   :  { %898 = vmatprep.subr.mxu0 %v128_v30  ;;  %1010 = vmatprep.subr.mxu1 %v1245_v0  ;;  %v509_v30 = vld [vmem:[#allocation5] sm:$0xff] }
  0x5b   :  { %899 = vmatpush3.msra.mxu0 %v112_v31  ;;  %v865_v31 = vld [vmem:[%s1637_s8] ss:$0 sm:$0xff]  ;;  %s1247_s8 = smov 64  }
  0x5c   :  { %900 = vmatprep.subr.mxu0 %v127_v32 }
  0x5d   :  { %901 = vmatpush3.msra.mxu0 %v111_v33 }
  0x5e   :  { %902 = vmatprep.subr.mxu0 %v126_v34 }
  0x5f   :  { %903 = vmatpush3.msra.mxu0 %v110_v35 }
  0x60   :  { %214 = vmatmul.mubr.f32.vlgmr.msra.gmra.mxu0 %v108_v36  ;;  %991 = vmatprep.subr.mxu0 %v1245_v0 }
  0x61   :  { %1007 = vmatprep.mubr.msk.f32.mxu0 %vm1246_vm0, %v1245_v0  ;;  %992 = vmatpush3.msra.mxu0 %v329_v61 }
  0x62   :  { %993 = vmatprep.subr.mxu0 %v1245_v0 }
  0x63   :  { %994 = vmatpush3.msra.mxu0 %v328_v62  ;;  %v624_v62 = vld [vmem:[#allocation7 + $0xb0] sm:$0xff] }
  0x64   :  { %995 = vmatprep.subr.mxu0 %v1245_v0 }
  0x65   :  { %996 = vmatpush3.msra.mxu0 %v327_v63  ;;  %v623_v63 = vld [vmem:[#allocation7 + $0xa8] sm:$0xff] }
  0x66   :  { %997 = vmatprep.subr.mxu0 %v1245_v0 }
  0x67   :  { %998 = vmatpush3.msra.mxu0 %v326_v1  ;;  %v622_v1 = vld [vmem:[#allocation7 + $0xa0] sm:$0xff] }
  0x68   :  { %999 = vmatprep.subr.mxu0 %v1245_v0 }
  0x69   :  { %1000 = vmatpush3.msra.mxu0 %v325_v2  ;;  %v621_v2 = vld [vmem:[#allocation7 + $0x98] sm:$0xff] }
  0x6a   :  { %1001 = vmatprep.subr.mxu0 %v1245_v0 }
  0x6b   :  { %1002 = vmatpush3.msra.mxu0 %v324_v3  ;;  %v620_v3 = vld [vmem:[#allocation7 + $0x90] sm:$0xff] }
  0x6c   :  { %1003 = vmatprep.subr.mxu0 %v1245_v0 }
  0x6d   :  { %1004 = vmatpush3.msra.mxu0 %v323_v4  ;;  %v619_v4 = vld [vmem:[#allocation7 + $0x88] sm:$0xff] }
  0x6e   :  { %1005 = vmatprep.subr.mxu0 %v1245_v0 }
  0x6f   :  { %1006 = vmatpush3.msra.mxu0 %v322_v5  ;;  %v618_v5 = vld [vmem:[#allocation7 + $0x80] sm:$0xff] }
  0x70   :  { %646 = vmatprep.subr.mxu0 %v633_v46 }
 0x120   :  { %v904_v51 = vpop.f32.mrf.mxu0 }
 0x122   :  { %v905_v53 = vpop.f32.mrf.mxu0 }
 0x123   :  { %v906_v54 = vadd.f32 %v905_v53, %v904_v51  ;;  %v629_v51 = vld [vmem:[#allocation7 + $0xd8] sm:$0xff] }
 0x124   :  { %v722_v53 = vld [vmem:[#allocation8 + $0x18] sm:$0xff] }
 0x125   :  { %v216_v55 = vadd.f32 %v906_v54, %v861_v52  ;;  %v628_v52 = vld [vmem:[#allocation7 + $0xd0] sm:$0xff]  ;;  %v627_v54 = vld [vmem:[#allocation7 + $0xc8] sm:$0xff] }
 0x127   :  { %v220_v56 = vmul.f32 0.70710677, %v216_v55  ;;  %v219_v58 = vmul.f32 0.5, %v216_v55  ;;  %v626_v55 = vld [vmem:[#allocation7 + $0xc0] sm:$0xff] }
 0x129   :  { %1073 = verf.f32 %v220_v56  ;;  %v721_v56 = vld [vmem:[#allocation8 + $0x10] sm:$0xff] }
 0x136   :  { %v1074_v57 = vpop.eup %1073 }
 0x137   :  { %v222_v59 = vadd.f32 1.0, %v1074_v57  ;;  %v625_v57 = vld [vmem:[#allocation7 + $0xb8] sm:$0xff] }
 0x139   :  { %v223_v60 = vmul.f32 %v222_v59, %v219_v58  ;;  %v720_v58 = vld [vmem:[#allocation8 + $0x8] sm:$0xff] }
 0x13b   :  { %989 = vmatmul.mubr.f32.vlgmr.msra.gmra.mxu1 %v223_v60  ;;  %v719_v60 = vld [vmem:[#allocation8] sm:$0xff] }
 0x13c   :  { %1018 = vmatprep.mubr.msk.f32.mxu1 %vm1246_vm0, %v1245_v0  ;;  %1011 = vmatpush3.msra.mxu1 %v416_v6  ;;  %v617_v6 = vld [vmem:[#allocation7 + $0x78] sm:$0xff] }
 0x13d   :  { %1012 = vmatprep.subr.mxu1 %v1245_v0 }
 0x13e   :  { %1013 = vmatpush3.msra.mxu1 %v415_v7  ;;  %v615_v7 = vld [vmem:[#allocation7 + $0x68] sm:$0xff] }
 0x13f   :  { %1014 = vmatprep.subr.mxu1 %v1245_v0 }
 0x140   :  { %1015 = vmatpush3.msra.mxu1 %v414_v17  ;;  %v605_v17 = vld [vmem:[#allocation7 + $0x18] sm:$0xff] }
 0x141   :  { %1016 = vmatprep.subr.mxu1 %v1245_v0 }
 0x142   :  { %1017 = vmatpush3.msra.mxu1 %v413_v18  ;;  %v604_v18 = vld [vmem:[#allocation7 + $0x10] sm:$0xff] }
 0x143   :  { %1021 = vmatprep.subr.mxu1 %v1245_v0 }
 0x1fb   :  { %v313_v9 = vpop.f32.mrf.mxu1 }
 0x1fc   :  { %v314_v10 = vadd.f32 %v862_v8, %v313_v9  ;;  %v614_v8 = vld [vmem:[#allocation7 + $0x60] sm:$0xff]  ;;  %v613_v9 = vld [vmem:[#allocation7 + $0x58] sm:$0xff] }
 0x1fd   :  { %v990_v11 = vpop.f32.mrf.mxu1 }
 0x1fe   :  { %v318_v12 = vmul.f32 0.70710677, %v314_v10  ;;  %v317_v14 = vmul.f32 0.5, %v314_v10  ;;  %v612_v10 = vld [vmem:[#allocation7 + $0x50] sm:$0xff]  ;;  %v611_v11 = vld [vmem:[#allocation7 + $0x48] sm:$0xff] }
 0x200   :  { %1075 = verf.f32 %v318_v12  ;;  %v610_v12 = vld [vmem:[#allocation7 + $0x40] sm:$0xff] }
 0x20d   :  { %v1076_v13 = vpop.eup %1075 }
 0x20e   :  { %v320_v15 = vadd.f32 1.0, %v1076_v13  ;;  %v609_v13 = vld [vmem:[#allocation7 + $0x38] sm:$0xff] }
 0x210   :  { %v321_v16 = vmul.f32 %v320_v15, %v317_v14  ;;  %v608_v14 = vld [vmem:[#allocation7 + $0x30] sm:$0xff]  ;;  %v607_v15 = vld [vmem:[#allocation7 + $0x28] sm:$0xff] }
 0x212   :  { %1008 = vmatmul.mubr.msk.f32.vlgmr.msra.gmra.mxu0 %vm337_vm1, %v321_v16  ;;  %v606_v16 = vld [vmem:[#allocation7 + $0x20] sm:$0xff] }
 0x213   :  { %710 = vmatprep.mubr.f32.mxu0 %v1245_v0  ;;  %647 = vmatpush1.msra.mxu0 %v632_v47 }
 0x214   :  { %648 = vmatprep.subr.mxu0 %v631_v48 }
 0x215   :  { %649 = vmatpush1.msra.mxu0 %v630_v49 }
 0x216   :  { %650 = vmatprep.subr.mxu0 %v629_v51 }
 0x217   :  { %651 = vmatpush1.msra.mxu0 %v628_v52 }
 0x218   :  { %652 = vmatprep.subr.mxu0 %v627_v54 }
 0x219   :  { %653 = vmatpush1.msra.mxu0 %v626_v55 }
 0x21a   :  { %654 = vmatprep.subr.mxu0 %v625_v57 }
 0x21b   :  { %655 = vmatpush1.msra.mxu0 %v624_v62 }
 0x21c   :  { %656 = vmatprep.subr.mxu0 %v623_v63 }
 0x21d   :  { %657 = vmatpush1.msra.mxu0 %v622_v1 }
 0x21e   :  { %658 = vmatprep.subr.mxu0 %v621_v2 }
 0x21f   :  { %659 = vmatpush1.msra.mxu0 %v620_v3 }
 0x220   :  { %660 = vmatprep.subr.mxu0 %v619_v4 }
 0x221   :  { %661 = vmatpush1.msra.mxu0 %v618_v5 }
 0x222   :  { %662 = vmatprep.subr.mxu0 %v617_v6 }
 0x2d2   :  { %v407_v20 = vpop.f32.mrf.mxu0 }
 0x2d3   :  { %v408_v21 = vadd.f32 %v863_v19, %v407_v20  ;;  %v603_v19 = vld [vmem:[#allocation7 + $0x8] sm:$0xff]  ;;  %v602_v20 = vld [vmem:[#allocation7] sm:$0xff] }
 0x2d4   :  { %v1009_v22 = vpop.f32.mrf.mxu0 }
 0x2d5   :  { %1019 = vmatmul.mubr.msk.f32.vlgmr.msra.gmra.mxu1 %vm411_vm2, %v408_v21  ;;  %412 = vst.msk [vmem:[#allocation10] sm:$0xff] %vm411_vm2, %v408_v21  ;;  %v868_v22 = vld [vmem:[%s1639_s10] ss:$0 sm:$0xff]  ;;  %s1248_s10 = smov [#allocation10]  }
 0x2d6   :  { %1037 = vmatprep.mubr.msk.f32.mxu1 %vm1246_vm0, %v1245_v0  ;;  %1022 = vmatpush3.msra.mxu1 %v516_v23  ;;  %s823_s22 = sshll.u32 %s1248_s10, 4  ;;  %s824_s22 = int_to_ptr.vmem [resolvable:$true] %s823_s22 }
 0x2d7   :  { %1023 = vmatprep.subr.mxu1 %v1245_v0  ;;  %s1167_s23 = scalar_lea.vmem %s824_s22, 128  ;;  %p1172_p7 = scmp.lt.s32.totalorder %s824_s22, %s824_s22 }
 0x2d8   :  { %1024 = vmatpush3.msra.mxu1 %v515_v24  ;;  %p1168_p6 = scmp.ne.s32.totalorder %s824_s22, %s1167_s23  ;;  %p1173_p8 = scmp.lt.s32.totalorder %s1167_s23, %s1167_s23 }
 0x2d9   :  { %1025 = vmatprep.subr.mxu1 %v1245_v0 }
 0x2da   :  { %1026 = vmatpush3.msra.mxu1 %v514_v25  ;;  %p1174_p9 = por %p1173_p8, %p1172_p7 }
 0x2db   :  { %1027 = vmatprep.subr.mxu1 %v1245_v0 }
 0x2dc   :  { %1028 = vmatpush3.msra.mxu1 %v513_v26  ;;  %p1175_p10 = pnand %p1174_p9, %p1168_p6 }
 0x2dd   :  { %1029 = vmatprep.subr.mxu1 %v1245_v0 }
 0x2de   :  { %1030 = vmatpush3.msra.mxu1 %v512_v27 }
 0x2df   :  { %1031 = vmatprep.subr.mxu1 %v1245_v0 }
 0x2e0   :  { %1032 = vmatpush3.msra.mxu1 %v511_v28 }
 0x2e1   :  { %1033 = vmatprep.subr.mxu1 %v1245_v0 }
 0x2e2   :  { %1034 = vmatpush3.msra.mxu1 %v510_v29 }
 0x2e3   :  { %1035 = vmatprep.subr.mxu1 %v1245_v0 }
 0x2e4   :  { %1036 = vmatpush3.msra.mxu1 %v509_v30 }
 0x2e5   :  { %1040 = vmatprep.subr.mxu1 %v1245_v0 }
 0x395   :  { %v493_v32 = vpop.f32.mrf.mxu1 }
 0x396   :  { %v494_v33 = vadd.f32 %v865_v31, %v493_v32  ;;  %v870_v31 = vld [vmem:[%s1643_s14] ss:$0 sm:$0xff] }
 0x397   :  { %v1020_v34 = vpop.f32.mrf.mxu1 }
 0x398   :  { %v498_v35 = vmul.f32 0.70710677, %v494_v33  ;;  %v867_v36 = vmul.f32 -1.442695, %v494_v33  ;;  %v497_v39 = vmul.f32 0.5, %v494_v33 }
 0x39a   :  { %1077 = verf.f32 %v498_v35 }
 0x39b   :  { %1079 = vpow2.f32 %v867_v36 }
 0x3a7   :  { %v1078_v37 = vpop.eup %1077 }
 0x3a8   :  { %v1080_v38 = vpop.eup %1079  ;;  %v500_v40 = vadd.f32 1.0, %v1078_v37 }
 0x3a9   :  { %v505_v41 = vadd.f32 1.0, %v1080_v38 }
 0x3aa   :  { %v501_v42 = vmul.f32 %v500_v40, %v497_v39 }
 0x3ab   :  { %1081 = vrcp.f32 %v505_v41 }
 0x3ac   :  { %1038 = vmatmul.mubr.msk.f32.vlgmr.msra.gmra.mxu1 %vm337_vm1, %v501_v42 }
 0x3ad   :  { %1041 = vmatpush3.msra.mxu1 %v726_v43  ;;  %1056 = vmatprep.mubr.msk.f32.mxu1 %vm1246_vm0, %v1245_v0 }
 0x3ae   :  { %1042 = vmatprep.subr.mxu1 %v1245_v0 }
 0x3af   :  { %1043 = vmatpush3.msra.mxu1 %v725_v44 }
 0x3b0   :  { %1044 = vmatprep.subr.mxu1 %v1245_v0 }
 0x3b1   :  { %1045 = vmatpush3.msra.mxu1 %v724_v45 }
 0x3b2   :  { %1046 = vmatprep.subr.mxu1 %v1245_v0 }
 0x3b3   :  { %1047 = vmatpush3.msra.mxu1 %v723_v50 }
 0x3b4   :  { %1048 = vmatprep.subr.mxu1 %v1245_v0 }
 0x3b5   :  { %1049 = vmatpush3.msra.mxu1 %v722_v53 }
 0x3b6   :  { %1050 = vmatprep.subr.mxu1 %v1245_v0 }
 0x3b7   :  { %1051 = vmatpush3.msra.mxu1 %v721_v56 }
 0x3b8   :  { %v1082_v59 = vpop.eup %1081  ;;  %1052 = vmatprep.subr.mxu1 %v1245_v0 }
 0x3b9   :  { %v508_v61 = vmul.f32 %v1082_v59, %v494_v33  ;;  %1053 = vmatpush3.msra.mxu1 %v720_v58 }
 0x3ba   :  { %1054 = vmatprep.subr.mxu1 %v1245_v0  ;;  %v616_v0 = vld [vmem:[#allocation7 + $0x70] sm:$0xff] }
 0x3bb   :  { %735 = vrot.lane.b32.xlu0 %v508_v61, %s1247_s8  ;;  %1055 = vmatpush3.msra.mxu1 %v719_v60 }
 0x3bc   :  { %663 = vmatpush1.msra.mxu0 %v616_v0 }
 0x3bd   :  { %664 = vmatprep.subr.mxu0 %v615_v7 }
 0x3be   :  { %665 = vmatpush1.msra.mxu0 %v614_v8 }
 0x3bf   :  { %666 = vmatprep.subr.mxu0 %v613_v9 }
 0x3c0   :  { %667 = vmatpush1.msra.mxu0 %v612_v10 }
 0x3c1   :  { %668 = vmatprep.subr.mxu0 %v611_v11 }
 0x3c2   :  { %669 = vmatpush1.msra.mxu0 %v610_v12 }
 0x3c3   :  { %670 = vmatprep.subr.mxu0 %v609_v13 }
 0x3c4   :  { %671 = vmatpush1.msra.mxu0 %v608_v14 }
 0x3c5   :  { %672 = vmatprep.subr.mxu0 %v607_v15 }
 0x3c6   :  { %673 = vmatpush1.msra.mxu0 %v606_v16 }
 0x3c7   :  { %674 = vmatprep.subr.mxu0 %v605_v17 }
 0x3c8   :  { %675 = vmatpush1.msra.mxu0 %v604_v18 }
 0x3c9   :  { %676 = vmatprep.subr.mxu0 %v603_v19 }
 0x3ca   :  { %677 = vmatpush1.msra.mxu0 %v602_v20 }
 0x42d   :  { %v736_v21 = vpop.permute.xlu0 %735 }
 0x42e   :  { %1057 = vmatmul.mubr.msk.f32.vlgmr.msra.gmra.mxu1 %vm337_vm1, %v736_v21 }
 0x46c   :  { %v593_v23 = vpop.f32.mrf.mxu1 }
 0x46d   :  { %v594_v24 = vadd.f32 %v868_v22, %v593_v23 }
 0x46e   :  { %v1039_v25 = vpop.f32.mrf.mxu1 }
 0x46f   :  { %v598_v26 = vmul.f32 0.70710677, %v594_v24  ;;  %v597_v28 = vmul.f32 0.5, %v594_v24 }
 0x471   :  { %1083 = verf.f32 %v598_v26 }
 0x47e   :  { %v1084_v27 = vpop.eup %1083 }
 0x47f   :  { %v600_v29 = vadd.f32 1.0, %v1084_v27 }
 0x481   :  { %v601_v30 = vmul.f32 %v600_v29, %v597_v28 }
 0x483   :  { %711 = vmatmul.mubr.f32.vlgmr.msra.gmra.mxu0 %v601_v30 }
 0x4ee   :  { %v805_v32 = vpop.f32.mrf.mxu1 }
 0x4ef   :  { %v806_v33 = vadd.f32 %v870_v31, %v805_v32 }
 0x4f0   :  { %v1058_v34 = vpop.f32.mrf.mxu1 }
 0x4f1   :  { %v809_v35 = vmul.f32 %v806_v33, %v806_v33 }
 0x4f3   :  { %v810_v36 = vsel %vm337_vm1, %v809_v35, 0.0 }
 0x4f4   :  { %811 = vadd.xlane.f32.xlu0 %v810_v36 }
 0x4f5   :  { %1178 = shalt.err (!%p1175_p10)
}
 0x4f6   :  { %826 = dma.vmem_to_hbm [thread:$0]  %s824_s22, 128, %s1644_s15, [#allocation4]   ;;  %v636_v37 = vlaneseq  ;;  %v634_v40 = vld [vmem:[%s1641_s12] sm:$0x3] }
 0x4f7   :  { %s1249_s13 = smov [#allocation11]  }
 0x4f8   :  { %v637_v38 = vshrl.u32 %v636_v37, 7  ;;  %s833_s27 = sshll.u32 %s1249_s13, 4  ;;  %s834_s27 = int_to_ptr.vmem [resolvable:$true] %s833_s27 }
 0x4f9   :  { %s1187_s15 = scalar_lea.vmem %s834_s27, 256  ;;  %p1192_p12 = scmp.lt.s32.totalorder %s834_s27, %s834_s27 }
 0x4fa   :  { %v638_v39 = vsub.s32 0, %v637_v38  ;;  %v642_v41 = vsub.s32 1, %v637_v38  ;;  %p1188_p11 = scmp.ne.s32.totalorder %s834_s27, %s1187_s15  ;;  %p1193_p13 = scmp.lt.s32.totalorder %s1187_s15, %s1187_s15 }
 0x4fc   :  { %v639_v42 = vrot.slane %v634_v40, %v638_v39  ;;  %v643_v43 = vrot.slane %v634_v40, %v642_v41  ;;  %p1194_p0 = por %p1193_p13, %p1192_p12 }
 0x4fe   :  { %p1195_p1 = pnand %p1194_p0, %p1188_p11 }
 0x543   :  { %v712_v44 = vpop.f32.mrf.mxu0 }
 0x544   :  { %v713_v45 = vadd.f32 %v712_v44, %v639_v42 }
 0x545   :  { %v714_v46 = vpop.f32.mrf.mxu0 }
 0x546   :  { %717 = vst [vmem:[#allocation11] sm:$0xff] %v713_v45  ;;  %v715_v47 = vadd.f32 %v714_v46, %v643_v43 }
 0x548   :  { %718 = vst [vmem:[#allocation11 + $0x8] sm:$0xff] %v715_v47 }
 0x549   :  { %1198 = shalt.err (!%p1195_p1)
}
 0x54a   :  { %836 = dma.vmem_to_hbm [thread:$0]  %s834_s27, 256, %s1645_s16, [#allocation12]  }
 0x54b   :  { %s1250_s25 = smov [#allocation13]  }
 0x54c   :  { %s843_s26 = sshll.u32 %s1250_s25, 4  ;;  %s844_s26 = int_to_ptr.vmem [resolvable:$true] %s843_s26 }
 0x54d   :  { %s1207_s3 = scalar_lea.vmem %s844_s26, 128  ;;  %p1212_p3 = scmp.lt.s32.totalorder %s844_s26, %s844_s26 }
 0x54e   :  { %p1208_p2 = scmp.ne.s32.totalorder %s844_s26, %s1207_s3  ;;  %p1213_p4 = scmp.lt.s32.totalorder %s1207_s3, %s1207_s3 }
 0x550   :  { %p1214_p5 = por %p1213_p4, %p1212_p3 }
 0x552   :  { %p1215_p6 = pnand %p1214_p5, %p1208_p2 }
 0x57d   :  { %v812_v48 = vpop.xlane.xlu0 %811 }
 0x57e   :  { %v813_v49 = vmax.f32 %v812_v48, 1e-24 }
 0x580   :  { %1085 = vrsqrt.f32 %v813_v49 }
 0x58d   :  { %v1086_v50 = vpop.eup %1085 }
 0x58e   :  { %v815_v51 = vmul.f32 %v1086_v50, %v806_v33 }
 0x590   :  { %816 = vst.msk [vmem:[#allocation13] sm:$0xff] %vm337_vm1, %v815_v51 }
 0x591   :  { %1218 = shalt.err (!%p1215_p6)
}
 0x592   :  { %846 = dma.vmem_to_hbm [thread:$0]  %s844_s26, 128, %s1646_s17, [#allocation12]  }
 0x593   :  { %1233 = dma.done.wait [#allocation4], 128  }
 0x594   :  { %1234 = vsyncadd [#allocation4], 4294967168 }
 0x595   :  { %1235 = dma.done.wait [#allocation12], 384  }
 0x596   :  { %1236 = vsyncadd [#allocation12], 4294966912 }
 0x597   :  { %856 = vsyncpa [#allocation3], 1 }
 0x598   :  { %857 = vsyncpa [#allocation6], 1 }
 0x599   :  { %858 = vsyncpa [#allocation9], 1 }
 0x59a   :  { %859 = vsyncpa [#allocation4], 1 }
 0x59b   :  { %860 = vsyncpa [#allocation12], 1 }

</bundles_post_ra>
